<compile_context>
chip_gen: v5e
topology: v5e:2x2
jax: 0.10.0
libtpu: 0.0.40
codegen_flags: <defaults>
</compile_context>

<pallas_src>
import functools

import jax
import jax.numpy as jnp
from jax import lax
from jax.experimental import pallas as pl
from jax.experimental.pallas import tpu as pltpu

# ----------------------------------------------------------------------------
# Hyperparameters (small shapes, consistent with WN.__init__ constraints)
# ----------------------------------------------------------------------------
IN_AUDIO_CHANNELS = 4
IN_MEL_CHANNELS = 8
N_LAYERS = 2
N_CHANNELS = 32            # must be even
KERNEL_SIZE = 3            # must be odd
MEL_UPSAMPLE_SCALE = 4
BATCH = 2
MEL_LEN = 16
AUDIO_LEN = MEL_LEN * MEL_UPSAMPLE_SCALE   # 64  ->  B*L = 128 lanes exactly
BN_EPS = 1e-5

NC = N_CHANNELS
NLC = 2 * N_CHANNELS
N_OUT = 2 * IN_AUDIO_CHANNELS
PAD = (KERNEL_SIZE - 1) // 2
MASK_OFFSETS = tuple(k - PAD for k in range(KERNEL_SIZE) if k != PAD)   # (-1, +1)

# Packed-activation sublane layout of the (X_ROWS, B*L) input x
AUD_ROW0 = 0                                   # rows [0, 4):  audio
MEL_ROW0 = IN_AUDIO_CHANNELS                   # rows [4, 12): upsampled mel
ONE_ROW = IN_AUDIO_CHANNELS + IN_MEL_CHANNELS  # row 12: constant 1 (bias column driver)
MASK_ROW0 = ONE_ROW + 1                        # rows 13..14: lane-only boundary masks
X_ROWS = -(-(MASK_ROW0 + len(MASK_OFFSETS)) // 8) * 8   # pad to sublane multiple -> 16

# Single consolidated weight-slab row layout (W_COLS lanes wide, f32)
R_AUG = 0                                      # [w_start | w_cond] + folded bias column
R_PW = NC + NLC * N_LAYERS                     # pointwise 1x1 weights, per layer
R_RS = R_PW + N_LAYERS * NLC                   # res/skip 1x1 (+ bias in col NC), layers 0..L-2
R_END = R_RS + (N_LAYERS - 1) * NC             # [w_end | w_end@rs_w_last]
R_DW = R_END + N_OUT                           # depthwise taps, per layer (BN folded)
R_BEND = R_DW + N_LAYERS * NC                  # w_end@rs_b_last + b_end (col 0)
R_TOTAL = R_BEND + N_OUT
W_COLS = max(2 * NC, X_ROWS, KERNEL_SIZE + 1)  # 64


# ----------------------------------------------------------------------------
# Pallas kernel (single invocation, no grid; everything lives in VMEM)
# ----------------------------------------------------------------------------
def wn_kernel(x_ref, w_ref, out_ref, *,
              n_layers, n_channels, kernel_size, x_rows, mask_row0,
              r_pw, r_rs, r_end, r_dw, r_bend):
    nc = n_channels
    nlc = 2 * nc
    pad = (kernel_size - 1) // 2
    n_out = out_ref.shape[0]

    x = x_ref[...]                                     # (X_ROWS, B*L)  f32
    bl = x.shape[-1]
    w = w_ref[...]                                     # (R_TOTAL, W_COLS) f32

    # Fused start_conv + cond_layer (+ all folded biases) as one MXU matmul.
    hc = jnp.dot(w[:r_pw, :x_rows], x, preferred_element_type=jnp.float32)
    h = hc[:nc, :]                                     # (nc,              B*L)
    cond = hc[nc:, :]                                  # (nlc * n_layers,  B*L)

    offs = [k - pad for k in range(kernel_size) if k != pad]

    for li in range(n_layers):
        pw_w = w[r_pw + li * nlc: r_pw + (li + 1) * nlc, :nc]          # (2nc, nc)
        dw_w = w[r_dw + li * nc: r_dw + (li + 1) * nc, :kernel_size]   # (nc, K)

        # Depthwise conv (BatchNorm folded into dw_w; its bias folded into the cond
        # bias column at pack time).  Boundary handling: lane-only 0/1 mask rows that
        # arrived packed inside x (pure broadcast multiply; no iota/compare/where).
        d = dw_w[:, pad:pad + 1] * h
        for idx, off in enumerate(offs):
            m = x[mask_row0 + idx: mask_row0 + idx + 1, :]             # (1, B*L)
            rolled = pltpu.roll(h, shift=(-off) % bl, axis=1)
            d = d + dw_w[:, off + pad: off + pad + 1] * (m * rolled)

        # Pointwise 1x1 conv + conditioning + fused_add_tanh_sigmoid_multiply
        z = jnp.dot(pw_w, d, preferred_element_type=jnp.float32) \
            + cond[li * nlc:(li + 1) * nlc, :]
        acts = jnp.tanh(z[:nc, :]) * jax.nn.sigmoid(z[nc:, :])

        if li < n_layers - 1:
            # res/skip 1x1 conv + residual connection
            rs_w = w[r_rs + li * nc: r_rs + (li + 1) * nc, :nc]
            rs_b = w[r_rs + li * nc: r_rs + (li + 1) * nc, nc:nc + 1]
            h = h + jnp.dot(rs_w, acts, preferred_element_type=jnp.float32) + rs_b
        else:
            # Last layer: res/skip conv + residual + end_conv folded into ONE push:
            #   out = w_end @ (h + rs_w@acts + rs_b) + b_end
            #       = [w_end | w_end@rs_w] @ [h; acts] + (w_end@rs_b + b_end)
            w_endcat = w[r_end:r_end + n_out, :nlc]                    # (n_out, 2nc)
            b_end = w[r_bend:r_bend + n_out, 0:1]                      # (n_out, 1)
            ha = jnp.concatenate([h, acts], axis=0)                    # (2nc, B*L)
            out = jnp.dot(w_endcat, ha, preferred_element_type=jnp.float32) + b_end
            out_ref[...] = out.astype(out_ref.dtype)


# ----------------------------------------------------------------------------
# Wrapper: everything under one jax.jit so packing / un-folding fuses with the call
# ----------------------------------------------------------------------------
@jax.jit
def wn_forward(audio, mel, w_slab):
    B, ca, L = audio.shape
    cm, lm = mel.shape[1], mel.shape[2]
    scale = L // lm
    bl = B * L

    # Nearest-upsampling the mel BEFORE the (pointwise-in-time) cond conv is
    # arithmetically identical to the module's upsample-after-conv; doing it here lets
    # us pack a single lane-dense activation input and fuse start_conv + cond_layer.
    mel_up = jnp.repeat(mel, scale, axis=-1) if scale > 1 else mel

    # Fold batch into the lane/time axis: (B, C, L) -> (C, B*L)
    audio_f = jnp.transpose(audio, (1, 0, 2)).reshape(ca, bl)
    mel_f = jnp.transpose(mel_up, (1, 0, 2)).reshape(cm, bl)

    # Lane-only depthwise boundary masks (stay inside each folded batch segment).
    pos = jnp.arange(bl, dtype=jnp.int32) % L
    mask_rows = [((pos + off >= 0) & (pos + off < L)).astype(audio.dtype)[None, :]
                 for off in MASK_OFFSETS]
    n_pad_rows = X_ROWS - (MASK_ROW0 + len(MASK_OFFSETS))

    pieces = [audio_f, mel_f, jnp.ones((1, bl), audio.dtype)] + mask_rows
    if n_pad_rows > 0:
        pieces.append(jnp.zeros((n_pad_rows, bl), audio.dtype))
    x = jnp.concatenate(pieces, axis=0)                                 # (X_ROWS, B*L)

    kernel = functools.partial(
        wn_kernel, n_layers=N_LAYERS, n_channels=NC, kernel_size=KERNEL_SIZE,
        x_rows=X_ROWS, mask_row0=MASK_ROW0,
        r_pw=R_PW, r_rs=R_RS, r_end=R_END, r_dw=R_DW, r_bend=R_BEND)

    n_out = 2 * ca
    flops = 2 * bl * (X_ROWS * R_PW                    # fused start/cond matmul
                      + N_LAYERS * NC * NLC            # pointwise 1x1
                      + (N_LAYERS - 1) * NC * NC       # res/skip 1x1
                      + NLC * n_out                    # folded end_conv epilogue
                      + N_LAYERS * NC * KERNEL_SIZE)   # depthwise taps
    transcendentals = N_LAYERS * NLC * bl              # tanh + sigmoid
    bytes_accessed = 4 * (x.size + w_slab.size + n_out * bl)

    out_f = pl.pallas_call(
        kernel,
        out_shape=jax.ShapeDtypeStruct((n_out, bl), audio.dtype),
        cost_estimate=pl.CostEstimate(flops=flops, transcendentals=transcendentals,
                                      bytes_accessed=bytes_accessed),
    )(x, w_slab)

    # unfold: (2*ca, B*L) -> (B, 2*ca, L)   (fuses under the surrounding jit)
    return jnp.transpose(out_f.reshape(n_out, B, L), (1, 0, 2))


# ----------------------------------------------------------------------------
# Parameter packing: all folds + ONE lane-dense weight slab (single input DMA)
# ----------------------------------------------------------------------------
def pack_params(p):
    nc, nlc, n_out = NC, NLC, N_OUT
    hi = lax.Precision.HIGHEST   # f32-accurate folds

    w = jnp.zeros((R_TOTAL, W_COLS), jnp.float32)

    # Fused prologue weight: block-diag [w_start | w_cond] with a bias column that also
    # absorbs pw_b and pw_w @ dw_b (legal because the pointwise conv is linear).
    w = w.at[R_AUG:R_AUG + nc, AUD_ROW0:AUD_ROW0 + IN_AUDIO_CHANNELS].set(p["w_start"])
    w = w.at[R_AUG:R_AUG + nc, ONE_ROW].set(p["b_start"][:, 0])
    w = w.at[R_AUG + nc:R_PW, MEL_ROW0:MEL_ROW0 + IN_MEL_CHANNELS].set(p["w_cond"])
    beta = p["b_cond"]
    for l in range(N_LAYERS):
        fold = p["pw_b"][l] + jnp.dot(p["pw_w"][l], p["dw_b"][l], precision=hi)
        beta = beta.at[l * nlc:(l + 1) * nlc].add(fold)
    w = w.at[R_AUG + nc:R_PW, ONE_ROW].set(beta[:, 0])

    # Pointwise 1x1 weights (all layers).
    w = w.at[R_PW:R_RS, :nc].set(p["pw_w"].reshape(N_LAYERS * nlc, nc))

    # res/skip 1x1 weights + bias for all but the last layer.
    for l in range(N_LAYERS - 1):
        w = w.at[R_RS + l * nc:R_RS + (l + 1) * nc, :nc].set(p["rs_w"][l])
        w = w.at[R_RS + l * nc:R_RS + (l + 1) * nc, nc].set(p["rs_b"][l][:, 0])

    # end_conv folded with the LAST layer's res/skip conv + residual.
    we_rs = jnp.dot(p["w_end"], p["rs_w"][N_LAYERS - 1], precision=hi)       # (n_out, nc)
    b_end_fold = p["b_end"] + jnp.dot(p["w_end"], p["rs_b"][N_LAYERS - 1],
                                      precision=hi)                          # (n_out, 1)
    w = w.at[R_END:R_END + n_out, :nc].set(p["w_end"])
    w = w.at[R_END:R_END + n_out, nc:nlc].set(we_rs)
    w = w.at[R_BEND:R_BEND + n_out, 0].set(b_end_fold[:, 0])

    # Depthwise taps (inference-mode BatchNorm already folded in init_params).
    w = w.at[R_DW:R_DW + N_LAYERS * nc, :KERNEL_SIZE].set(
        p["dw_w"].reshape(N_LAYERS * nc, KERNEL_SIZE))

    # NOTE: flip this slab (and the packed x / dot-operand casts) to bfloat16 when the
    # kernel is scaled up; kept f32 here so the 1e-4 parity check vs the fp32 reference
    # holds (review correctness concern #1), and DMA bytes are negligible at this size.
    return w


# ----------------------------------------------------------------------------
# Deterministic parameter construction (shapes from WN.__init__)
# ----------------------------------------------------------------------------
def init_params(key):
    keys = iter(jax.random.split(key, 64))

    def normal(shape, s=0.1):
        return s * jax.random.normal(next(keys), shape, jnp.float32)

    def weight_norm(shape):
        # effective weight of torch.nn.utils.weight_norm(..., name='weight', dim=0)
        v = normal(shape, 0.2)
        g = jax.random.uniform(next(keys), (shape[0],) + (1,) * (len(shape) - 1),
                               jnp.float32, 0.5, 1.5)
        nrm = jnp.sqrt(jnp.sum(v * v, axis=tuple(range(1, len(shape))), keepdims=True))
        return g * v / nrm

    nc, nlc = NC, NLC

    w_start = weight_norm((nc, IN_AUDIO_CHANNELS))
    b_start = normal((nc, 1))
    w_cond = weight_norm((nlc * N_LAYERS, IN_MEL_CHANNELS))
    b_cond = normal((nlc * N_LAYERS, 1))

    dw_w, dw_b, pw_w, pw_b, rs_w, rs_b = [], [], [], [], [], []
    for _ in range(N_LAYERS):
        # DepthwiseSeparableConv1d = BatchNorm1d -> depthwise conv -> pointwise conv
        gamma = jax.random.uniform(next(keys), (nc,), jnp.float32, 0.5, 1.5)
        beta = normal((nc,))
        r_mean = normal((nc,))
        r_var = jax.random.uniform(next(keys), (nc,), jnp.float32, 0.5, 1.5)
        s = gamma / jnp.sqrt(r_var + BN_EPS)
        t = beta - gamma * r_mean / jnp.sqrt(r_var + BN_EPS)

        w_dw = normal((nc, KERNEL_SIZE), 0.2)        # groups = n_channels
        b_dw = normal((nc,))
        dw_w.append(w_dw * s[:, None])               # fold inference-mode BN
        dw_b.append((b_dw + t * jnp.sum(w_dw, axis=1))[:, None])

        pw_w.append(normal((nlc, nc), 0.2))          # pointwise 1x1
        pw_b.append(normal((nlc, 1)))

        rs_w.append(weight_norm((nc, nc)))           # res/skip 1x1 (weight-normed)
        rs_b.append(normal((nc, 1)))

    # NOTE: the reference module zero-initialises end_conv (training detail);
    # small non-zero deterministic values are used here so the check is non-trivial.
    w_end = normal((N_OUT, nc), 0.1)
    b_end = normal((N_OUT, 1))

    return {"w_start": w_start, "b_start": b_start,
            "w_cond": w_cond, "b_cond": b_cond,
            "dw_w": jnp.stack(dw_w), "dw_b": jnp.stack(dw_b),
            "pw_w": jnp.stack(pw_w), "pw_b": jnp.stack(pw_b),
            "rs_w": jnp.stack(rs_w), "rs_b": jnp.stack(rs_b),
            "w_end": w_end, "b_end": b_end}


# ----------------------------------------------------------------------------
# Pure-JAX reference (mirrors the PyTorch forward, upsample AFTER cond conv)
# ----------------------------------------------------------------------------
def wn_reference(audio, mel, params):
    B, _, L = audio.shape
    scale = L // mel.shape[-1]
    nc = NC
    pad = PAD

    h = jnp.einsum("oc,bcl->bol", params["w_start"], audio) + params["b_start"]
    cond = jnp.einsum("oc,bcl->bol", params["w_cond"], mel) + params["b_cond"]
    if scale > 1:
        cond = jnp.repeat(cond, scale, axis=-1)      # nearest upsample

    for li in range(N_LAYERS):
        hp = jnp.pad(h, ((0, 0), (0, 0), (pad, pad)))
        d = jnp.zeros_like(h) + params["dw_b"][li]
        for k in range(KERNEL_SIZE):
            d = d + params["dw_w"][li][:, k][None, :, None] * hp[:, :, k:k + L]
        p = jnp.einsum("oc,bcl->bol", params["pw_w"][li], d) + params["pw_b"][li]
        z = p + cond[:, li * 2 * nc:(li + 1) * 2 * nc, :]
        acts = jnp.tanh(z[:, :nc, :]) * jax.nn.sigmoid(z[:, nc:, :])
        r = jnp.einsum("oc,bcl->bol", params["rs_w"][li], acts) + params["rs_b"][li]
        h = h + r
    return jnp.einsum("oc,bcl->bol", params["w_end"], h) + params["b_end"]


if __name__ == "__main__":
    key = jax.random.PRNGKey(0)
    k_audio, k_mel, k_params = jax.random.split(key, 3)
    audio = jax.random.normal(k_audio, (BATCH, IN_AUDIO_CHANNELS, AUDIO_LEN), jnp.float32)
    mel = jax.random.normal(k_mel, (BATCH, IN_MEL_CHANNELS, MEL_LEN), jnp.float32)
    params = init_params(k_params)
    w_slab = pack_params(params)

    out = wn_forward(audio, mel, w_slab)
    out = jax.block_until_ready(out)

    ref = wn_reference(audio, mel, params)
    assert out.shape == (BATCH, 2 * IN_AUDIO_CHANNELS, AUDIO_LEN), out.shape
    max_diff = float(jnp.max(jnp.abs(out - ref)))
    assert jnp.allclose(out, ref, atol=1e-4, rtol=1e-4), f"max abs diff {max_diff}"
    print("KERNEL_OK")
</pallas_src>

<mosaic_0001>
module attributes {stable_mosaic.version = 11 : i64} {
  func.func @wn_kernel(%arg0: memref<16x128xf32, #tpu.memory_space<vmem>>, %arg1: memref<400x64xf32, #tpu.memory_space<vmem>>, %arg2: memref<8x128xf32, #tpu.memory_space<vmem>>) attributes {dimension_semantics = [], scalar_prefetch = 0 : i64, scratch_operands = 0 : i64, tpu.core_type = #tpu.core_type<tc>} {
    %c0 = arith.constant 0 : index
    %c0_0 = arith.constant 0 : index
    %0 = vector.load %arg0[%c0, %c0_0] : memref<16x128xf32, #tpu.memory_space<vmem>>, vector<16x128xf32>
    %c0_1 = arith.constant 0 : index
    %c0_2 = arith.constant 0 : index
    %1 = vector.load %arg1[%c0_1, %c0_2] : memref<400x64xf32, #tpu.memory_space<vmem>>, vector<400x64xf32>
    %2 = vector.extract_strided_slice %1 {offsets = [0, 0], sizes = [160, 16], strides = [1, 1]} : vector<400x64xf32> to vector<160x16xf32>
    %cst = arith.constant dense<0.000000e+00> : vector<160x128xf32>
    %3 = tpu.matmul %2, %0, %cst {dimension_numbers = #tpu.dot_dimension_numbers<[1], [0], [0], [1], [0, 0, 1, 1], [], []>} : vector<160x16xf32>, vector<16x128xf32>, vector<160x128xf32> -> vector<160x128xf32>
    %4 = vector.extract_strided_slice %3 {offsets = [0, 0], sizes = [32, 128], strides = [1, 1]} : vector<160x128xf32> to vector<32x128xf32>
    %5 = vector.extract_strided_slice %3 {offsets = [32, 0], sizes = [128, 128], strides = [1, 1]} : vector<160x128xf32> to vector<128x128xf32>
    %6 = vector.extract_strided_slice %1 {offsets = [160, 0], sizes = [64, 32], strides = [1, 1]} : vector<400x64xf32> to vector<64x32xf32>
    %7 = vector.extract_strided_slice %1 {offsets = [328, 0], sizes = [32, 3], strides = [1, 1]} : vector<400x64xf32> to vector<32x3xf32>
    %8 = vector.extract_strided_slice %7 {offsets = [0, 1], sizes = [32, 1], strides = [1, 1]} : vector<32x3xf32> to vector<32x1xf32>
    %9 = vector.broadcast %8 : vector<32x1xf32> to vector<32x128xf32>
    %10 = arith.mulf %9, %4 : vector<32x128xf32>
    %11 = vector.extract_strided_slice %0 {offsets = [13, 0], sizes = [1, 128], strides = [1, 1]} : vector<16x128xf32> to vector<1x128xf32>
    %c1_i32 = arith.constant 1 : i32
    %12 = tpu.dynamic_rotate %4 by %c1_i32 dim 1 : vector<32x128xf32>, i32 -> vector<32x128xf32>
    %13 = vector.extract_strided_slice %7 {offsets = [0, 0], sizes = [32, 1], strides = [1, 1]} : vector<32x3xf32> to vector<32x1xf32>
    %14 = vector.broadcast %11 : vector<1x128xf32> to vector<32x128xf32>
    %15 = arith.mulf %14, %12 : vector<32x128xf32>
    %16 = vector.broadcast %13 : vector<32x1xf32> to vector<32x128xf32>
    %17 = arith.mulf %16, %15 : vector<32x128xf32>
    %18 = arith.addf %10, %17 : vector<32x128xf32>
    %19 = vector.extract_strided_slice %0 {offsets = [14, 0], sizes = [1, 128], strides = [1, 1]} : vector<16x128xf32> to vector<1x128xf32>
    %c127_i32 = arith.constant 127 : i32
    %20 = tpu.dynamic_rotate %4 by %c127_i32 dim 1 : vector<32x128xf32>, i32 -> vector<32x128xf32>
    %21 = vector.extract_strided_slice %7 {offsets = [0, 2], sizes = [32, 1], strides = [1, 1]} : vector<32x3xf32> to vector<32x1xf32>
    %22 = vector.broadcast %19 : vector<1x128xf32> to vector<32x128xf32>
    %23 = arith.mulf %22, %20 : vector<32x128xf32>
    %24 = vector.broadcast %21 : vector<32x1xf32> to vector<32x128xf32>
    %25 = arith.mulf %24, %23 : vector<32x128xf32>
    %26 = arith.addf %18, %25 : vector<32x128xf32>
    %cst_3 = arith.constant dense<0.000000e+00> : vector<64x128xf32>
    %27 = tpu.matmul %6, %26, %cst_3 {dimension_numbers = #tpu.dot_dimension_numbers<[1], [0], [0], [1], [0, 0, 1, 1], [], []>} : vector<64x32xf32>, vector<32x128xf32>, vector<64x128xf32> -> vector<64x128xf32>
    %28 = vector.extract_strided_slice %5 {offsets = [0, 0], sizes = [64, 128], strides = [1, 1]} : vector<128x128xf32> to vector<64x128xf32>
    %29 = arith.addf %27, %28 : vector<64x128xf32>
    %30 = vector.extract_strided_slice %29 {offsets = [0, 0], sizes = [32, 128], strides = [1, 1]} : vector<64x128xf32> to vector<32x128xf32>
    %31 = math.tanh %30 : vector<32x128xf32>
    %32 = vector.extract_strided_slice %29 {offsets = [32, 0], sizes = [32, 128], strides = [1, 1]} : vector<64x128xf32> to vector<32x128xf32>
    %33 = arith.negf %32 : vector<32x128xf32>
    %34 = math.exp %33 : vector<32x128xf32>
    %cst_4 = arith.constant 1.000000e+00 : f32
    %35 = vector.broadcast %cst_4 : f32 to vector<32x128xf32>
    %36 = arith.addf %35, %34 : vector<32x128xf32>
    %37 = arith.divf %35, %36 : vector<32x128xf32>
    %38 = arith.mulf %31, %37 : vector<32x128xf32>
    %39 = vector.extract_strided_slice %1 {offsets = [288, 0], sizes = [32, 32], strides = [1, 1]} : vector<400x64xf32> to vector<32x32xf32>
    %40 = vector.extract_strided_slice %1 {offsets = [288, 32], sizes = [32, 1], strides = [1, 1]} : vector<400x64xf32> to vector<32x1xf32>
    %cst_5 = arith.constant dense<0.000000e+00> : vector<32x128xf32>
    %41 = tpu.matmul %39, %38, %cst_5 {dimension_numbers = #tpu.dot_dimension_numbers<[1], [0], [0], [1], [0, 0, 1, 1], [], []>} : vector<32x32xf32>, vector<32x128xf32>, vector<32x128xf32> -> vector<32x128xf32>
    %42 = arith.addf %4, %41 : vector<32x128xf32>
    %43 = vector.broadcast %40 : vector<32x1xf32> to vector<32x128xf32>
    %44 = arith.addf %42, %43 : vector<32x128xf32>
    %45 = vector.extract_strided_slice %1 {offsets = [224, 0], sizes = [64, 32], strides = [1, 1]} : vector<400x64xf32> to vector<64x32xf32>
    %46 = vector.extract_strided_slice %1 {offsets = [360, 0], sizes = [32, 3], strides = [1, 1]} : vector<400x64xf32> to vector<32x3xf32>
    %47 = vector.extract_strided_slice %46 {offsets = [0, 1], sizes = [32, 1], strides = [1, 1]} : vector<32x3xf32> to vector<32x1xf32>
    %48 = vector.broadcast %47 : vector<32x1xf32> to vector<32x128xf32>
    %49 = arith.mulf %48, %44 : vector<32x128xf32>
    %50 = vector.extract_strided_slice %0 {offsets = [13, 0], sizes = [1, 128], strides = [1, 1]} : vector<16x128xf32> to vector<1x128xf32>
    %c1_i32_6 = arith.constant 1 : i32
    %51 = tpu.dynamic_rotate %44 by %c1_i32_6 dim 1 : vector<32x128xf32>, i32 -> vector<32x128xf32>
    %52 = vector.extract_strided_slice %46 {offsets = [0, 0], sizes = [32, 1], strides = [1, 1]} : vector<32x3xf32> to vector<32x1xf32>
    %53 = vector.broadcast %50 : vector<1x128xf32> to vector<32x128xf32>
    %54 = arith.mulf %53, %51 : vector<32x128xf32>
    %55 = vector.broadcast %52 : vector<32x1xf32> to vector<32x128xf32>
    %56 = arith.mulf %55, %54 : vector<32x128xf32>
    %57 = arith.addf %49, %56 : vector<32x128xf32>
    %58 = vector.extract_strided_slice %0 {offsets = [14, 0], sizes = [1, 128], strides = [1, 1]} : vector<16x128xf32> to vector<1x128xf32>
    %c127_i32_7 = arith.constant 127 : i32
    %59 = tpu.dynamic_rotate %44 by %c127_i32_7 dim 1 : vector<32x128xf32>, i32 -> vector<32x128xf32>
    %60 = vector.extract_strided_slice %46 {offsets = [0, 2], sizes = [32, 1], strides = [1, 1]} : vector<32x3xf32> to vector<32x1xf32>
    %61 = vector.broadcast %58 : vector<1x128xf32> to vector<32x128xf32>
    %62 = arith.mulf %61, %59 : vector<32x128xf32>
    %63 = vector.broadcast %60 : vector<32x1xf32> to vector<32x128xf32>
    %64 = arith.mulf %63, %62 : vector<32x128xf32>
    %65 = arith.addf %57, %64 : vector<32x128xf32>
    %cst_8 = arith.constant dense<0.000000e+00> : vector<64x128xf32>
    %66 = tpu.matmul %45, %65, %cst_8 {dimension_numbers = #tpu.dot_dimension_numbers<[1], [0], [0], [1], [0, 0, 1, 1], [], []>} : vector<64x32xf32>, vector<32x128xf32>, vector<64x128xf32> -> vector<64x128xf32>
    %67 = vector.extract_strided_slice %5 {offsets = [64, 0], sizes = [64, 128], strides = [1, 1]} : vector<128x128xf32> to vector<64x128xf32>
    %68 = arith.addf %66, %67 : vector<64x128xf32>
    %69 = vector.extract_strided_slice %68 {offsets = [0, 0], sizes = [32, 128], strides = [1, 1]} : vector<64x128xf32> to vector<32x128xf32>
    %70 = math.tanh %69 : vector<32x128xf32>
    %71 = vector.extract_strided_slice %68 {offsets = [32, 0], sizes = [32, 128], strides = [1, 1]} : vector<64x128xf32> to vector<32x128xf32>
    %72 = arith.negf %71 : vector<32x128xf32>
    %73 = math.exp %72 : vector<32x128xf32>
    %cst_9 = arith.constant 1.000000e+00 : f32
    %74 = vector.broadcast %cst_9 : f32 to vector<32x128xf32>
    %75 = arith.addf %74, %73 : vector<32x128xf32>
    %76 = arith.divf %74, %75 : vector<32x128xf32>
    %77 = arith.mulf %70, %76 : vector<32x128xf32>
    %78 = vector.extract_strided_slice %1 {offsets = [320, 0], sizes = [8, 64], strides = [1, 1]} : vector<400x64xf32> to vector<8x64xf32>
    %79 = vector.extract_strided_slice %1 {offsets = [392, 0], sizes = [8, 1], strides = [1, 1]} : vector<400x64xf32> to vector<8x1xf32>
    %80 = tpu.concatenate %44, %77 in 0 : vector<32x128xf32>, vector<32x128xf32> -> vector<64x128xf32>
    %cst_10 = arith.constant dense<0.000000e+00> : vector<8x128xf32>
    %81 = tpu.matmul %78, %80, %cst_10 {dimension_numbers = #tpu.dot_dimension_numbers<[1], [0], [0], [1], [0, 0, 1, 1], [], []>} : vector<8x64xf32>, vector<64x128xf32>, vector<8x128xf32> -> vector<8x128xf32>
    %82 = vector.broadcast %79 : vector<8x1xf32> to vector<8x128xf32>
    %83 = arith.addf %81, %82 : vector<8x128xf32>
    %c0_11 = arith.constant 0 : index
    %c0_12 = arith.constant 0 : index
    %84 = vector.load %arg2[%c0_11, %c0_12] : memref<8x128xf32, #tpu.memory_space<vmem>>, vector<8x128xf32>
    tpu.vector_store %arg2[%c0_11, %c0_12], %83 {strides = array<i32>} : memref<8x128xf32, #tpu.memory_space<vmem>>, vector<8x128xf32>,
    return
  }
}

</mosaic_0001>

<bundles_post_ra>
// kernel: wn_forward.1
= control target key start
LH: loop header
LB: loop body
LE: loop exit
PB: predicated region body
PF: predicated region fallthrough
CT: control target
= control target key end

     0   :  { %v927_v2 = vmov 1   ;;  %vm63_vm0 = vcmask 130048   ;;  %v928_v4 = vmov 0   ;;  %v929_v8 = vmov 2   ;;  %s930_s26 = smov 1   ;;  %s931_s27 = smov 127   ;;  %s1448_s0 = inlined_call_operand.vmem [shape: f32[16,128], index: 0, kind: input, shape index: {}]   ;;  %s1449_s1 = inlined_call_operand.vmem [shape: f32[400,64], index: 1, kind: input, shape index: {}]   ;;  %s1450_s2 = inlined_call_operand.vmem [shape: f32[8,128], index: 2, kind: output, shape index: {}]  }
   0x1   :  { %v951_v0 = vld [vmem:[%s1448_s0 + $0x8] sm:$0xff]  ;;  %v11_v1 = vld [vmem:[%s1448_s0] sm:$0xff]  ;;  %854 = vset.pattern.permute.xlu2 %v927_v2  ;;  %852 = vset.pattern.permute.xlu0 %v927_v2  ;;  %v56_v5 = vld [vmem:[%s1449_s1 + $0x158] sm:$0xff]  ;;  %vm299_vm1 = vcmask 261120  }
   0x2   :  { %138 = vmatpush.msra.mxu0 %v951_v0  ;;  %v13_v3 = vld [vmem:[%s1449_s1] sm:$0xff]  ;;  %853 = vset.pattern.permute.xlu1 %v928_v4  ;;  %v14_v7 = vld [vmem:[%s1449_s1 + $0x8] sm:$0xff]  ;;  %v15_v9 = vld [vmem:[%s1449_s1 + $0x10] sm:$0xff]  ;;  %v1043_v36 = vperm.slane %v951_v0, 5  ;;  %v1046_v37 = vperm.slane %v951_v0, 6 }
   0x3   :  { %v57_v6 = vld [vmem:[%s1449_s1 + $0x160] sm:$0xff]  ;;  %842 = vmatpush.msra.mxu1 %v951_v0  ;;  %843 = vmatpush.msra.mxu2 %v951_v0  ;;  %v55_v10 = vld [vmem:[%s1449_s1 + $0x150] sm:$0xff]  ;;  %v16_v11 = vld [vmem:[%s1449_s1 + $0x18] sm:$0xff] }
   0x4   :  { %139 = vmatpush.msra.mxu0 %v11_v1  ;;  %213 = vperm.xlu2 %854, %v56_v5   ;;  %v54_v14 = vld [vmem:[%s1449_s1 + $0x148] sm:$0xff]  ;;  %v24_v21 = vld [vmem:[%s1449_s1 + $0x58] sm:$0xff]  ;;  %v25_v23 = vld [vmem:[%s1449_s1 + $0x60] sm:$0xff] }
   0x5   :  { %793 = vmatmul.msk.f32.vlgmr.msra.gmra.mxu0 %vm63_vm0, %v13_v3  ;;  %218 = vperm.xlu0 %852, %v57_v6   ;;  %v26_v27 = vld [vmem:[%s1449_s1 + $0x68] sm:$0xff]  ;;  %v17_v31 = vld [vmem:[%s1449_s1 + $0x20] sm:$0xff]  ;;  %v19_v46 = vld [vmem:[%s1449_s1 + $0x30] sm:$0xff] }
   0x6   :  { %251 = vperm.xlu1 %853, %v57_v6   ;;  %844 = vmatpush.msra.mxu1 %v11_v1  ;;  %v18_v34 = vld [vmem:[%s1449_s1 + $0x28] sm:$0xff]  ;;  %v20_v0 = vld [vmem:[%s1449_s1 + $0x38] sm:$0xff] }
   0x7   :  { %845 = vmatpush.msra.mxu2 %v11_v1  ;;  %804 = vmatmul.msk.f32.vlgmr.msra.gmra.mxu1 %vm63_vm0, %v24_v21  ;;  %v35_v21 = vld [vmem:[%s1449_s1 + $0xb0] sm:$0xff] }
   0xc   :  { %855 = vset.pattern.permute.xlu2 %v928_v4 }
   0xd   :  { %794 = vmatmul.msk.f32.gmra.mxu0 %vm63_vm0, %v14_v7  ;;  %247 = vperm.xlu2 %855, %v56_v5  }
   0xe   :  { %856 = vset.pattern.permute.xlu1 %v929_v8  ;;  %859 = vset.pattern.permute.xlu0 %v929_v8 }
   0xf   :  { %288 = vperm.xlu1 %856, %v57_v6   ;;  %805 = vmatmul.msk.f32.gmra.mxu1 %vm63_vm0, %v25_v23  ;;  %v36_v23 = vld [vmem:[%s1449_s1 + $0xb8] sm:$0xff] }
  0x15   :  { %795 = vmatmul.msk.f32.gmra.mxu0 %vm63_vm0, %v15_v9  ;;  %857 = vset.pattern.permute.xlu2 %v927_v2 }
  0x16   :  { %208 = vperm.xlu2 %857, %v55_v10  }
  0x17   :  { %858 = vset.pattern.permute.xlu1 %v928_v4  ;;  %806 = vmatmul.msk.f32.gmra.mxu1 %vm63_vm0, %v26_v27  ;;  %v40_v27 = vld [vmem:[%s1449_s1 + $0xd8] sm:$0xff] }
  0x18   :  { %243 = vperm.xlu1 %858, %v55_v10  }
  0x1d   :  { %796 = vmatmul.msk.f32.gmra.mxu0 %vm63_vm0, %v16_v11 }
  0x1e   :  { %861 = vset.pattern.permute.xlu2 %v928_v4 }
  0x20   :  { %860 = vset.pattern.permute.xlu1 %v927_v2 }
  0x25   :  { %797 = vmatmul.msk.f32.gmra.mxu0 %vm63_vm0, %v17_v31 }
  0x2d   :  { %798 = vmatmul.msk.f32.gmra.mxu0 %vm63_vm0, %v18_v34 }
  0x35   :  { %799 = vmatmul.msk.f32.gmra.mxu0 %vm63_vm0, %v19_v46  ;;  %v29_v46 = vld [vmem:[%s1449_s1 + $0x80] sm:$0xff] }
  0x3d   :  { %800 = vmatmul.msk.f32.gmra.mxu0 %vm63_vm0, %v20_v0  ;;  %v32_v0 = vld [vmem:[%s1449_s1 + $0x98] sm:$0xff] }
  0x5e   :  { %v214_v17 = vpop.permute.xlu2 %213 }
  0x67   :  { %v248_v19 = vpop.permute.xlu2 %247 }
  0x70   :  { %v209_v22 = vpop.permute.xlu2 %208 }
  0x77   :  { %v219_v25 = vpop.permute.xlu0 %218 }
  0x78   :  { %v252_v18 = vpop.permute.xlu1 %251 }
  0x81   :  { %v289_v20 = vpop.permute.xlu1 %288 }
  0x82   :  { %v994_v12 = vpop.f32.mrf.mxu0 }
  0x83   :  { %225 = vrot.lane.b32.xlu0 %v994_v12, %s930_s26 }
  0x8a   :  { %v998_v13 = vpop.f32.mrf.mxu0  ;;  %v244_v24 = vpop.permute.xlu1 %243 }
  0x8b   :  { %264 = vrot.lane.b32.xlu2 %v998_v13, %s931_s27  ;;  %227 = vrot.lane.b32.xlu1 %v998_v13, %s930_s26  ;;  %v222_v54 = vmul.f32 %v209_v22, %v998_v13  ;;  %v23_v22 = vld [vmem:[%s1449_s1 + $0x50] sm:$0xff] }
  0x92   :  { %v1007_v15 = vpop.f32.mrf.mxu0 }
  0x93   :  { %239 = vperm.xlu2 %861, %v54_v14   ;;  %266 = vrot.lane.b32.xlu0 %v1007_v15, %s931_s27  ;;  %v223_v53 = vmul.f32 %v214_v17, %v1007_v15  ;;  %v33_v17 = vld [vmem:[%s1449_s1 + $0xa0] sm:$0xff] }
  0x94   :  { %229 = vrot.lane.b32.xlu1 %v1007_v15, %s930_s26 }
  0x9a   :  { %v1013_v16 = vpop.f32.mrf.mxu0 }
  0x9b   :  { %268 = vrot.lane.b32.xlu2 %v1013_v16, %s931_s27  ;;  %231 = vrot.lane.b32.xlu0 %v1013_v16, %s930_s26  ;;  %v224_v45 = vmul.f32 %v219_v25, %v1013_v16  ;;  %v38_v25 = vld [vmem:[%s1449_s1 + $0xc8] sm:$0xff] }
  0x9c   :  { %203 = vperm.xlu1 %860, %v54_v14   ;;  %862 = vset.pattern.permute.xlu2 %v929_v8 }
  0xa3   :  { %280 = vperm.xlu2 %862, %v55_v10   ;;  %284 = vperm.xlu0 %859, %v56_v5  }
  0xa4   :  { %262 = vrot.lane.b32.xlu1 %v994_v12, %s931_s27 }
  0xab   :  { %276 = vperm.xlu0 %859, %v54_v14  }
  0xe5   :  { %v265_v26 = vpop.permute.xlu2 %264 }
  0xe6   :  { %v272_v57 = vmul.f32 %v1046_v37, %v265_v26  ;;  %v39_v26 = vld [vmem:[%s1449_s1 + $0xd0] sm:$0xff] }
  0xed   :  { %v240_v30 = vpop.permute.xlu2 %239 }
  0xf5   :  { %v226_v28 = vpop.permute.xlu0 %225  ;;  %v269_v35 = vpop.permute.xlu2 %268 }
  0xf6   :  { %v274_v39 = vmul.f32 %v1046_v37, %v269_v35  ;;  %v234_v61 = vmul.f32 %v1043_v36, %v226_v28  ;;  %v174_v28 = vpop.f32.mrf.mxu1 }
  0xf8   :  { %v294_v47 = vmul.f32 %v289_v20, %v274_v39  ;;  %v254_v6 = vmul.f32 %v240_v30, %v234_v61  ;;  %v22_v20 = vld [vmem:[%s1449_s1 + $0x48] sm:$0xff]  ;;  %v153_v30 = vpop.f32.mrf.mxu0 }
  0xfd   :  { %v228_v29 = vpop.permute.xlu1 %227  ;;  %v281_v55 = vpop.permute.xlu2 %280 }
  0xfe   :  { %v235_v40 = vmul.f32 %v1043_v36, %v228_v29  ;;  %v292_v62 = vmul.f32 %v281_v55, %v272_v57  ;;  %v1112_v29 = vpop.f32.mrf.mxu1 }
 0x100   :  { %v255_v48 = vmul.f32 %v244_v24, %v235_v40  ;;  %v37_v24 = vld [vmem:[%s1449_s1 + $0xc0] sm:$0xff] }
 0x102   :  { %v259_v60 = vadd.f32 %v255_v48, %v222_v54 }
 0x104   :  { %v296_v5 = vadd.f32 %v292_v62, %v259_v60 }
 0x105   :  { %v267_v32 = vpop.permute.xlu0 %266 }
 0x106   :  { %v230_v33 = vpop.permute.xlu1 %229  ;;  %v273_v51 = vmul.f32 %v1046_v37, %v267_v32  ;;  %v1114_v31 = vpop.f32.mrf.mxu1 }
 0x107   :  { %v236_v41 = vmul.f32 %v1043_v36, %v230_v33  ;;  %v1116_v32 = vpop.f32.mrf.mxu0 }
 0x109   :  { %v256_v49 = vmul.f32 %v248_v19, %v236_v41  ;;  %v34_v19 = vld [vmem:[%s1449_s1 + $0xa8] sm:$0xff]  ;;  %v27_v41 = vld [vmem:[%s1449_s1 + $0x70] sm:$0xff] }
 0x10a   :  { %807 = vmatmul.msk.f32.vlgmr.msra.gmra.mxu2 %vm63_vm0, %v27_v41 }
 0x10b   :  { %v260_v59 = vadd.f32 %v256_v49, %v223_v53  ;;  %v30_v49 = vld [vmem:[%s1449_s1 + $0x88] sm:$0xff] }
 0x10d   :  { %v232_v38 = vpop.permute.xlu0 %231 }
 0x10e   :  { %v237_v42 = vmul.f32 %v1043_v36, %v232_v38  ;;  %v204_v43 = vpop.permute.xlu1 %203 }
 0x10f   :  { %v221_v3 = vmul.f32 %v204_v43, %v994_v12  ;;  %v1120_v35 = vpop.f32.mrf.mxu0  ;;  %v28_v43 = vld [vmem:[%s1449_s1 + $0x78] sm:$0xff] }
 0x110   :  { %v257_v44 = vmul.f32 %v252_v18, %v237_v42  ;;  %v21_v18 = vld [vmem:[%s1449_s1 + $0x40] sm:$0xff] }
 0x111   :  { %v258_v10 = vadd.f32 %v254_v6, %v221_v3  ;;  %801 = vmatmul.msk.f32.gmra.mxu0 %vm63_vm0, %v21_v18 }
 0x112   :  { %v261_v50 = vadd.f32 %v257_v44, %v224_v45  ;;  %808 = vmatmul.msk.f32.gmra.mxu2 %vm63_vm0, %v28_v43 }
 0x114   :  { %v298_v52 = vadd.f32 %v294_v47, %v261_v50  ;;  %v1148_v50 = vld [vmem:[%s1449_s1 + $0x138] sm:$0xff] }
 0x115   :  { %v285_v56 = vpop.permute.xlu0 %284 }
 0x116   :  { %v293_v58 = vmul.f32 %v285_v56, %v273_v51  ;;  %336 = vmatpush.msrb.mxu1 %v298_v52  ;;  %v263_v1 = vpop.permute.xlu1 %262  ;;  %v932_v51 = vmov 32   ;;  %v1155_v56 = vld [vmem:[%s1449_s1 + $0x120] sm:$0xff] }
 0x117   :  { %v271_v7 = vmul.f32 %v1046_v37, %v263_v1  ;;  %v1126_v40 = vpop.f32.mrf.mxu0  ;;  %863 = vset.pattern.permute.xlu1 %v932_v51  ;;  %864 = vset.pattern.permute.xlu2 %v932_v51 }
 0x118   :  { %v297_v63 = vadd.f32 %v293_v58, %v260_v59  ;;  %507 = vperm.xlu1 %863, %v1148_v50   ;;  %865 = vset.pattern.permute.xlu0 %v932_v51  ;;  %v31_v58 = vld [vmem:[%s1449_s1 + $0x90] sm:$0xff] }
 0x119   :  { %802 = vmatmul.msk.f32.gmra.mxu0 %vm63_vm0, %v22_v20 }
 0x11a   :  { %337 = vmatpush.msrb.mxu1 %v297_v63  ;;  %809 = vmatmul.msk.f32.gmra.mxu2 %vm63_vm0, %v29_v46 }
 0x11c   :  { %338 = vmatpush.msrb.mxu1 %v296_v5 }
 0x11d   :  { %v277_v9 = vpop.permute.xlu0 %276 }
 0x11e   :  { %v291_v11 = vmul.f32 %v277_v9, %v271_v7  ;;  %v61_v7 = vld [vmem:[%s1449_s1 + $0x180] sm:$0xff] }
 0x120   :  { %v295_v14 = vadd.f32 %v291_v11, %v258_v10  ;;  %495 = vperm.xlu1 %863, %v1155_v56  }
 0x121   :  { %803 = vmatmul.msk.f32.gmra.mxu0 %vm63_vm0, %v23_v22 }
 0x122   :  { %339 = vmatpush.msrb.mxu1 %v295_v14  ;;  %810 = vmatmul.msk.f32.gmra.mxu2 %vm63_vm0, %v30_v49  ;;  %v1182_v14 = vld [vmem:[%s1449_s1 + $0x128] sm:$0xff] }
 0x123   :  { %813 = vmatmul.msk.f32.vlgmr.msrb.gmra.mxu1 %vm299_vm1, %v33_v17  ;;  %499 = vperm.xlu0 %865, %v1182_v14  }
 0x128   :  { %866 = vset.pattern.permute.xlu1 %v927_v2 }
 0x129   :  { %531 = vperm.xlu1 %866, %v61_v7  }
 0x12a   :  { %811 = vmatmul.msk.f32.gmra.mxu2 %vm63_vm0, %v31_v58 }
 0x12b   :  { %814 = vmatmul.msk.f32.gmra.mxu1 %vm299_vm1, %v34_v19  ;;  %867 = vset.pattern.permute.xlu0 %v928_v4 }
 0x12c   :  { %563 = vperm.xlu0 %867, %v61_v7  }
 0x131   :  { %870 = vset.pattern.permute.xlu1 %v929_v8 }
 0x132   :  { %812 = vmatmul.msk.f32.gmra.mxu2 %vm63_vm0, %v32_v0  ;;  %599 = vperm.xlu1 %870, %v61_v7  }
 0x133   :  { %815 = vmatmul.msk.f32.gmra.mxu1 %vm299_vm1, %v35_v21 }
 0x134   :  { %873 = vset.pattern.permute.xlu0 %v929_v8 }
 0x13a   :  { %872 = vset.pattern.permute.xlu1 %v928_v4 }
 0x13b   :  { %816 = vmatmul.msk.f32.gmra.mxu1 %vm299_vm1, %v36_v23 }
 0x143   :  { %817 = vmatmul.msk.f32.gmra.mxu1 %vm299_vm1, %v37_v24 }
 0x14b   :  { %818 = vmatmul.msk.f32.gmra.mxu1 %vm299_vm1, %v38_v25 }
 0x153   :  { %819 = vmatmul.msk.f32.gmra.mxu1 %vm299_vm1, %v39_v26 }
 0x15b   :  { %820 = vmatmul.msk.f32.gmra.mxu1 %vm299_vm1, %v40_v27  ;;  %v1206_v27 = vld [vmem:[%s1449_s1 + $0x130] sm:$0xff] }
 0x15c   :  { %503 = vperm.xlu2 %864, %v1206_v27  }
 0x164   :  { %868 = vset.pattern.permute.xlu2 %v927_v2 }
 0x18e   :  { %v165_v44 = vpop.f32.mrf.mxu0 }
 0x196   :  { %v168_v47 = vpop.f32.mrf.mxu0 }
 0x19e   :  { %v171_v57 = vpop.f32.mrf.mxu0 }
 0x1a0   :  { %v341_v33 = vpop.f32.mrf.mxu1 }
 0x1a1   :  { %v1118_v34 = vadd.f32 %v341_v33, %v153_v30  ;;  %v1213_v33 = vld [vmem:[%s1449_s1 + $0x170] sm:$0xff] }
 0x1a2   :  { %555 = vperm.xlu1 %872, %v1213_v33  }
 0x1a8   :  { %v1122_v38 = vpop.f32.mrf.mxu1 }
 0x1a9   :  { %v345_v26 = vadd.f32 %v1122_v38, %v1116_v32 }
 0x1aa   :  { %874 = vset.pattern.permute.xlu1 %v927_v2 }
 0x1b0   :  { %v1124_v39 = vpop.f32.mrf.mxu1 }
 0x1b8   :  { %v1132_v42 = vpop.f32.mrf.mxu1 }
 0x1b9   :  { %v351_v32 = vadd.f32 %v1132_v42, %v1126_v40 }
 0x1c0   :  { %v353_v45 = vpop.f32.mrf.mxu1 }
 0x1c1   :  { %v354_v48 = vadd.f32 %v353_v45, %v165_v44 }
 0x1c3   :  { %v821_v54 = vmul.f32 -1.442695, %v354_v48 }
 0x1c5   :  { %879 = vpow2.f32 %v821_v54 }
 0x1c8   :  { %v356_v52 = vpop.f32.mrf.mxu1 }
 0x1c9   :  { %v357_v53 = vadd.f32 %v356_v52, %v168_v47 }
 0x1cb   :  { %v822_v55 = vmul.f32 -1.442695, %v357_v53  ;;  %v880_v62 = vpop.eup %879 }
 0x1cc   :  { %v1165_v1 = vadd.f32 1.0, %v880_v62 }
 0x1cd   :  { %881 = vpow2.f32 %v822_v55 }
 0x1ce   :  { %vm390_vm2 = vweird.f32 %v1165_v1 }
 0x1d0   :  { %v359_v59 = vpop.f32.mrf.mxu1 }
 0x1d1   :  { %v360_v60 = vadd.f32 %v359_v59, %v171_v57  ;;  %v1247_v57 = vld [vmem:[%s1449_s1 + $0x168] sm:$0xff] }
 0x1d2   :  { %516 = vperm.xlu1 %874, %v1247_v57  }
 0x1d3   :  { %v823_v61 = vmul.f32 -1.442695, %v360_v60  ;;  %v882_v63 = vpop.eup %881 }
 0x1d4   :  { %v1167_v3 = vadd.f32 1.0, %v882_v63 }
 0x1d5   :  { %883 = vpow2.f32 %v823_v61 }
 0x1d6   :  { %885 = vrcp.f32 %v1165_v1  ;;  %vm405_vm8 = vweird.f32 %v1167_v3  ;;  %v409_v54 = vand.u32 2147483647, %v1167_v3  ;;  %v411_v55 = vand.u32 2147483648, %v1167_v3 }
 0x1d7   :  { %887 = vrcp.f32 %v1167_v3 }
 0x1d8   :  { %v362_v5 = vpop.f32.mrf.mxu1  ;;  %vm410_vm0 = vcmp.eq.f32.partialorder %v409_v54, 8.507059e+37 }
 0x1d9   :  { %v363_v6 = vadd.f32 %v362_v5, %v174_v28  ;;  %v348_v28 = vadd.f32 %v1124_v39, %v1120_v35  ;;  %v394_v5 = vand.u32 2147483647, %v1165_v1 }
 0x1da   :  { %877 = vset.pattern.permute.xlu1 %v928_v4 }
 0x1db   :  { %v884_v9 = vpop.eup %883  ;;  %v824_v10 = vmul.f32 -1.442695, %v363_v6  ;;  %v396_v6 = vand.u32 2147483648, %v1165_v1 }
 0x1dc   :  { %v1176_v11 = vadd.f32 1.0, %v884_v9  ;;  %v1184_v17 = vpop.eup %885 }
 0x1dd   :  { %889 = vpow2.f32 %v824_v10  ;;  %v1187_v18 = vpop.eup %887  ;;  %v386_v24 = vmul.f32 %v1184_v17, %v1165_v1  ;;  %vm391_vm9 = vweird.f32 %v1184_v17 }
 0x1de   :  { %891 = vrcp.f32 %v1176_v11  ;;  %v401_v23 = vmul.f32 %v1187_v18, %v1167_v3  ;;  %vm406_vm4 = vweird.f32 %v1187_v18  ;;  %vm420_vm5 = vweird.f32 %v1176_v11  ;;  %vm392_vm15 = vmor %vm390_vm2, %vm391_vm9 }
 0x1df   :  { %v387_v38 = vsub.f32 1.0, %v386_v24  ;;  %v424_v46 = vand.u32 2147483647, %v1176_v11  ;;  %v426_v47 = vand.u32 2147483648, %v1176_v11  ;;  %vm1256_vm11 = vmor %vm405_vm8, %vm406_vm4 }
 0x1e0   :  { %v402_v30 = vsub.f32 1.0, %v401_v23  ;;  %v397_v23 = vor.u32 1.1754944e-38, %v396_v6 }
 0x1e1   :  { %v388_v44 = vmul.f32 %v1184_v17, %v387_v38  ;;  %v427_v3 = vor.u32 1.1754944e-38, %v426_v47  ;;  %vm425_vm14 = vcmp.eq.f32.partialorder %v424_v46, 8.507059e+37 }
 0x1e2   :  { %v403_v43 = vmul.f32 %v1187_v18, %v402_v30  ;;  %v508_v30 = vpop.permute.xlu1 %507 }
 0x1e3   :  { %v890_v19 = vpop.eup %889  ;;  %v389_v62 = vadd.f32 %v1184_v17, %v388_v44 }
 0x1e4   :  { %v1190_v20 = vpop.eup %891  ;;  %v1192_v21 = vadd.f32 1.0, %v890_v19  ;;  %v404_v51 = vadd.f32 %v1187_v18, %v403_v43  ;;  %v412_v19 = vor.u32 1.1754944e-38, %v411_v55 }
 0x1e5   :  { %v416_v22 = vmul.f32 %v1190_v20, %v1176_v11  ;;  %vm421_vm3 = vweird.f32 %v1190_v20 }
 0x1e6   :  { %893 = vrcp.f32 %v1192_v21  ;;  %v441_v45 = vand.u32 2147483648, %v1192_v21  ;;  %v439_v49 = vand.u32 2147483647, %v1192_v21  ;;  %vm1236_vm7 = vmor %vm420_vm5, %vm421_vm3  ;;  %vm435_vm10 = vweird.f32 %v1192_v21 }
 0x1e7   :  { %v417_v25 = vsub.f32 1.0, %v416_v22  ;;  %895 = vtanh.f32 %v345_v26  ;;  %v408_v9 = vsel %vm1256_vm11, %v1187_v18, %v404_v51  ;;  %v60_v18 = vld [vmem:[%s1449_s1 + $0x178] sm:$0xff]  ;;  %vm395_vm3 = vcmp.eq.f32.partialorder %v394_v5, 8.507059e+37 }
 0x1e8   :  { %897 = vtanh.f32 %v348_v28  ;;  %v442_v0 = vor.u32 1.1754944e-38, %v441_v45  ;;  %vm440_vm13 = vcmp.eq.f32.partialorder %v439_v49, 8.507059e+37  ;;  %v413_v22 = vsel %vm410_vm0, %v412_v19, %v408_v9  ;;  %526 = vperm.xlu2 %868, %v60_v18   ;;  %595 = vperm.xlu0 %873, %v60_v18  }
 0x1e9   :  { %v418_v41 = vmul.f32 %v1190_v20, %v417_v25  ;;  %899 = vtanh.f32 %v351_v32 }
 0x1ea   :  { %901 = vtanh.f32 %v1118_v34 }
 0x1eb   :  { %v419_v42 = vadd.f32 %v1190_v20, %v418_v41  ;;  %v496_v41 = vpop.permute.xlu1 %495 }
 0x1ec   :  { %v894_v35 = vpop.eup %893 }
 0x1ed   :  { %v431_v39 = vmul.f32 %v894_v35, %v1192_v21  ;;  %vm436_vm6 = vweird.f32 %v894_v35  ;;  %v896_v52 = vpop.eup %895  ;;  %v423_v60 = vsel %vm1236_vm7, %v1190_v20, %v419_v42  ;;  %v393_v21 = vsel %vm392_vm15, %v1184_v17, %v389_v62 }
 0x1ee   :  { %v898_v58 = vpop.eup %897  ;;  %vm437_vm12 = vmor %vm435_vm10, %vm436_vm6  ;;  %v428_v11 = vsel %vm425_vm14, %v427_v3, %v423_v60  ;;  %v398_v24 = vsel %vm395_vm3, %v397_v23, %v393_v21  ;;  %v446_v25 = vmul.f32 %v896_v52, %v413_v22 }
 0x1ef   :  { %v432_v40 = vsub.f32 1.0, %v431_v39  ;;  %v900_v63 = vpop.eup %899  ;;  %v447_v34 = vmul.f32 %v898_v58, %v428_v11 }
 0x1f0   :  { %v902_v1 = vpop.eup %901  ;;  %869 = vset.pattern.permute.xlu2 %v928_v4 }
 0x1f1   :  { %v433_v48 = vmul.f32 %v894_v35, %v432_v40  ;;  %v445_v26 = vmul.f32 %v902_v1, %v398_v24  ;;  %559 = vperm.xlu2 %869, %v60_v18   ;;  %v504_v40 = vpop.permute.xlu2 %503 }
 0x1f3   :  { %v434_v59 = vadd.f32 %v894_v35, %v433_v48 }
 0x1f5   :  { %v438_v7 = vsel %vm437_vm12, %v894_v35, %v434_v59  ;;  %v500_v35 = vpop.permute.xlu0 %499 }
 0x1f6   :  { %v443_v10 = vsel %vm440_vm13, %v442_v0, %v438_v7 }
 0x1f7   :  { %v448_v20 = vmul.f32 %v900_v63, %v443_v10 }
 0x1f9   :  { %473 = vmatpush.msrb.mxu2 %v448_v20  ;;  %871 = vset.pattern.permute.xlu2 %v927_v2 }
 0x1fa   :  { %521 = vperm.xlu2 %871, %v1213_v33  }
 0x1fb   :  { %474 = vmatpush.msrb.mxu2 %v447_v34 }
 0x1fd   :  { %475 = vmatpush.msrb.mxu2 %v446_v25  ;;  %v564_v52 = vpop.permute.xlu0 %563 }
 0x1ff   :  { %476 = vmatpush.msrb.mxu2 %v445_v26 }
 0x200   :  { %825 = vmatmul.msk.f32.vlgmr.msrb.gmra.mxu2 %vm299_vm1, %v1155_v56  ;;  %v1293_v56 = vpop.f32.mrf.mxu2 }
 0x202   :  { %875 = vset.pattern.permute.xlu2 %v928_v4 }
 0x203   :  { %551 = vperm.xlu2 %875, %v1247_v57  }
 0x208   :  { %826 = vmatmul.msk.f32.gmra.mxu2 %vm299_vm1, %v1182_v14  ;;  %v1295_v17 = vpop.f32.mrf.mxu2 }
 0x20b   :  { %876 = vset.pattern.permute.xlu2 %v929_v8 }
 0x210   :  { %827 = vmatmul.msk.f32.gmra.mxu2 %vm299_vm1, %v1206_v27  ;;  %v1297_v14 = vpop.f32.mrf.mxu2 }
 0x218   :  { %828 = vmatmul.msk.f32.gmra.mxu2 %vm299_vm1, %v1148_v50  ;;  %v1299_v2 = vpop.f32.mrf.mxu2 }
 0x220   :  { %v1301_v28 = vpop.f32.mrf.mxu2 }
 0x228   :  { %v1303_v27 = vpop.f32.mrf.mxu2 }
 0x25a   :  { %v596_v55 = vpop.permute.xlu0 %595 }
 0x283   :  { %v478_v32 = vpop.f32.mrf.mxu2 }
 0x284   :  { %v490_v38 = vadd.f32 %v478_v32, %v994_v12 }
 0x286   :  { %v1306_v50 = vadd.f32 %v496_v41, %v490_v38 }
 0x288   :  { %538 = vrot.lane.b32.xlu0 %v1306_v50, %s930_s26 }
 0x28b   :  { %v481_v8 = vpop.f32.mrf.mxu2 }
 0x28c   :  { %v491_v39 = vadd.f32 %v481_v8, %v998_v13 }
 0x28e   :  { %v1311_v43 = vadd.f32 %v500_v35, %v491_v39 }
 0x290   :  { %576 = vrot.lane.b32.xlu2 %v1311_v43, %s931_s27  ;;  %540 = vrot.lane.b32.xlu1 %v1311_v43, %s930_s26 }
 0x293   :  { %v484_v44 = vpop.f32.mrf.mxu2 }
 0x294   :  { %v492_v12 = vadd.f32 %v484_v44, %v1007_v15  ;;  %v527_v15 = vpop.permute.xlu2 %526 }
 0x296   :  { %v1318_v42 = vadd.f32 %v504_v40, %v492_v12  ;;  %v41_v40 = vld [vmem:[%s1449_s1 + $0xe0] sm:$0xff] }
 0x298   :  { %578 = vrot.lane.b32.xlu0 %v1318_v42, %s931_s27  ;;  %542 = vrot.lane.b32.xlu2 %v1318_v42, %s930_s26  ;;  %v536_v19 = vmul.f32 %v527_v15, %v1318_v42  ;;  %v45_v15 = vld [vmem:[%s1449_s1 + $0x100] sm:$0xff] }
 0x29b   :  { %v487_v13 = vpop.f32.mrf.mxu2 }
 0x29c   :  { %v493_v45 = vadd.f32 %v487_v13, %v1013_v16  ;;  %v560_v47 = vpop.permute.xlu2 %559  ;;  %v532_v16 = vpop.permute.xlu1 %531  ;;  %v42_v13 = vld [vmem:[%s1449_s1 + $0xe8] sm:$0xff] }
 0x29e   :  { %v1325_v46 = vadd.f32 %v508_v30, %v493_v45  ;;  %v44_v45 = vld [vmem:[%s1449_s1 + $0xf8] sm:$0xff] }
 0x2a0   :  { %580 = vrot.lane.b32.xlu1 %v1325_v46, %s931_s27  ;;  %544 = vrot.lane.b32.xlu2 %v1325_v46, %s930_s26  ;;  %v537_v10 = vmul.f32 %v532_v16, %v1325_v46  ;;  %v47_v16 = vld [vmem:[%s1449_s1 + $0x110] sm:$0xff] }
 0x2a1   :  { %587 = vperm.xlu0 %873, %v1247_v57  }
 0x2a4   :  { %v522_v48 = vpop.permute.xlu2 %521  ;;  %v600_v51 = vpop.permute.xlu1 %599 }
 0x2a5   :  { %v535_v11 = vmul.f32 %v522_v48, %v1311_v43  ;;  %v48_v48 = vld [vmem:[%s1449_s1 + $0x118] sm:$0xff] }
 0x2a8   :  { %574 = vrot.lane.b32.xlu1 %v1306_v50, %s931_s27  ;;  %591 = vperm.xlu2 %876, %v1213_v33  }
 0x2a9   :  { %878 = vset.pattern.permute.xlu0 %v928_v4 }
 0x2ac   :  { %v552_v49 = vpop.permute.xlu2 %551  ;;  %v556_v54 = vpop.permute.xlu1 %555 }
 0x2b4   :  { %v517_v59 = vpop.permute.xlu1 %516 }
 0x2b5   :  { %v534_v41 = vmul.f32 %v517_v59, %v1306_v50 }
 0x2ea   :  { %v577_v53 = vpop.permute.xlu2 %576 }
 0x2eb   :  { %v583_v34 = vmul.f32 %v577_v53, %v1046_v37 }
 0x2f2   :  { %v543_v58 = vpop.permute.xlu2 %542 }
 0x2f3   :  { %v548_v4 = vmul.f32 %v543_v58, %v1043_v36 }
 0x2f5   :  { %v568_v6 = vmul.f32 %v560_v47, %v548_v4  ;;  %v46_v47 = vld [vmem:[%s1449_s1 + $0x108] sm:$0xff] }
 0x2f7   :  { %v572_v25 = vadd.f32 %v568_v6, %v536_v19 }
 0x2fa   :  { %v539_v57 = vpop.permute.xlu0 %538  ;;  %v545_v60 = vpop.permute.xlu2 %544 }
 0x2fb   :  { %v549_v62 = vmul.f32 %v545_v60, %v1043_v36  ;;  %v546_v20 = vmul.f32 %v539_v57, %v1043_v36 }
 0x2fd   :  { %v569_v0 = vmul.f32 %v564_v52, %v549_v62  ;;  %v566_v26 = vmul.f32 %v552_v49, %v546_v20 }
 0x2ff   :  { %v573_v22 = vadd.f32 %v569_v0, %v537_v10  ;;  %v570_v44 = vadd.f32 %v566_v26, %v534_v41 }
 0x302   :  { %v541_v61 = vpop.permute.xlu1 %540  ;;  %v592_v18 = vpop.permute.xlu2 %591 }
 0x303   :  { %v547_v63 = vmul.f32 %v541_v61, %v1043_v36  ;;  %v603_v30 = vmul.f32 %v592_v18, %v583_v34  ;;  %v62_v18 = vld [vmem:[%s1449_s1 + $0x188] sm:$0xff] }
 0x304   :  { %761 = vperm.xlu1 %877, %v62_v18  }
 0x305   :  { %v567_v7 = vmul.f32 %v556_v54, %v547_v63 }
 0x307   :  { %v571_v1 = vadd.f32 %v567_v7, %v535_v11 }
 0x309   :  { %v607_v36 = vadd.f32 %v603_v30, %v571_v1 }
 0x30a   :  { %v579_v33 = vpop.permute.xlu0 %578 }
 0x30b   :  { %v584_v3 = vmul.f32 %v579_v33, %v1046_v37 }
 0x30d   :  { %v604_v21 = vmul.f32 %v596_v55, %v584_v3 }
 0x30f   :  { %v608_v32 = vadd.f32 %v604_v21, %v572_v25 }
 0x312   :  { %v581_v5 = vpop.permute.xlu1 %580 }
 0x313   :  { %v585_v9 = vmul.f32 %v581_v5, %v1046_v37  ;;  %v588_v35 = vpop.permute.xlu0 %587 }
 0x315   :  { %v605_v23 = vmul.f32 %v600_v51, %v585_v9 }
 0x317   :  { %v609_v24 = vadd.f32 %v605_v23, %v573_v22 }
 0x319   :  { %646 = vmatpush.msra.mxu3 %v609_v24 }
 0x31a   :  { %v575_v38 = vpop.permute.xlu1 %574 }
 0x31b   :  { %v582_v8 = vmul.f32 %v575_v38, %v1046_v37  ;;  %647 = vmatpush.msra.mxu3 %v608_v32  ;;  %v43_v37 = vld [vmem:[%s1449_s1 + $0xf0] sm:$0xff] }
 0x31d   :  { %v602_v39 = vmul.f32 %v588_v35, %v582_v8  ;;  %648 = vmatpush.msra.mxu3 %v607_v36 }
 0x31f   :  { %v606_v12 = vadd.f32 %v602_v39, %v570_v44 }
 0x321   :  { %649 = vmatpush.msra.mxu3 %v606_v12 }
 0x322   :  { %829 = vmatmul.msk.f32.vlgmr.msra.gmra.mxu3 %vm299_vm1, %v41_v40 }
 0x32a   :  { %830 = vmatmul.msk.f32.gmra.mxu3 %vm299_vm1, %v42_v13 }
 0x332   :  { %831 = vmatmul.msk.f32.gmra.mxu3 %vm299_vm1, %v43_v37 }
 0x33a   :  { %832 = vmatmul.msk.f32.gmra.mxu3 %vm299_vm1, %v44_v45 }
 0x342   :  { %833 = vmatmul.msk.f32.gmra.mxu3 %vm299_vm1, %v45_v15 }
 0x34a   :  { %834 = vmatmul.msk.f32.gmra.mxu3 %vm299_vm1, %v46_v47 }
 0x352   :  { %835 = vmatmul.msk.f32.gmra.mxu3 %vm299_vm1, %v47_v16 }
 0x35a   :  { %836 = vmatmul.msk.f32.gmra.mxu3 %vm299_vm1, %v48_v48 }
 0x3a5   :  { %v651_v49 = vpop.f32.mrf.mxu3 }
 0x3ad   :  { %v654_v51 = vpop.f32.mrf.mxu3 }
 0x3ae   :  { %v655_v23 = vadd.f32 %v654_v51, %v1114_v31  ;;  %v652_v31 = vadd.f32 %v651_v49, %v1112_v29 }
 0x3b5   :  { %v657_v52 = vpop.f32.mrf.mxu3 }
 0x3b6   :  { %v658_v34 = vadd.f32 %v657_v52, %v1293_v56 }
 0x3bd   :  { %v660_v53 = vpop.f32.mrf.mxu3 }
 0x3be   :  { %v661_v25 = vadd.f32 %v660_v53, %v1295_v17 }
 0x3c5   :  { %v663_v54 = vpop.f32.mrf.mxu3 }
 0x3c6   :  { %v664_v55 = vadd.f32 %v663_v54, %v1297_v14 }
 0x3c8   :  { %v837_v57 = vmul.f32 -1.442695, %v664_v55 }
 0x3ca   :  { %903 = vpow2.f32 %v837_v57 }
 0x3cd   :  { %v666_v58 = vpop.f32.mrf.mxu3 }
 0x3ce   :  { %v667_v59 = vadd.f32 %v666_v58, %v1299_v2 }
 0x3d0   :  { %v838_v60 = vmul.f32 -1.442695, %v667_v59  ;;  %v904_v4 = vpop.eup %903 }
 0x3d1   :  { %v1383_v0 = vadd.f32 1.0, %v904_v4 }
 0x3d2   :  { %905 = vpow2.f32 %v838_v60 }
 0x3d3   :  { %vm700_vm1 = vweird.f32 %v1383_v0  ;;  %v704_v53 = vand.u32 2147483647, %v1383_v0  ;;  %v706_v54 = vand.u32 2147483648, %v1383_v0 }
 0x3d5   :  { %v669_v61 = vpop.f32.mrf.mxu3  ;;  %v707_v4 = vor.u32 1.1754944e-38, %v706_v54  ;;  %vm705_vm3 = vcmp.eq.f32.partialorder %v704_v53, 8.507059e+37 }
 0x3d6   :  { %v670_v62 = vadd.f32 %v669_v61, %v1301_v28 }
 0x3d8   :  { %v839_v33 = vmul.f32 -1.442695, %v670_v62  ;;  %v906_v63 = vpop.eup %905 }
 0x3d9   :  { %v1385_v3 = vadd.f32 1.0, %v906_v63 }
 0x3da   :  { %907 = vpow2.f32 %v839_v33 }
 0x3db   :  { %909 = vrcp.f32 %v1383_v0  ;;  %vm715_vm8 = vweird.f32 %v1385_v3  ;;  %v719_v13 = vand.u32 2147483647, %v1385_v3  ;;  %v721_v37 = vand.u32 2147483648, %v1385_v3 }
 0x3dc   :  { %911 = vrcp.f32 %v1385_v3 }
 0x3dd   :  { %v672_v5 = vpop.f32.mrf.mxu3  ;;  %v722_v60 = vor.u32 1.1754944e-38, %v721_v37  ;;  %vm720_vm0 = vcmp.eq.f32.partialorder %v719_v13, 8.507059e+37 }
 0x3de   :  { %v673_v14 = vadd.f32 %v672_v5, %v1303_v27 }
 0x3e0   :  { %v908_v6 = vpop.eup %907  ;;  %v840_v2 = vmul.f32 -1.442695, %v673_v14 }
 0x3e1   :  { %v693_v7 = vadd.f32 1.0, %v908_v6  ;;  %v1390_v28 = vpop.eup %909 }
 0x3e2   :  { %913 = vpow2.f32 %v840_v2  ;;  %v1392_v9 = vpop.eup %911  ;;  %v696_v21 = vmul.f32 %v1390_v28, %v1383_v0  ;;  %vm701_vm9 = vweird.f32 %v1390_v28  ;;  %v53_v0 = vld [vmem:[%s1449_s1 + $0x140] sm:$0xff]  ;;  %v762_v2 = vpop.permute.xlu1 %761 }
 0x3e3   :  { %915 = vrcp.f32 %v693_v7  ;;  %v711_v20 = vmul.f32 %v1392_v9, %v1385_v3  ;;  %vm716_vm4 = vweird.f32 %v1392_v9  ;;  %vm730_vm5 = vweird.f32 %v693_v7  ;;  %vm702_vm15 = vmor %vm700_vm1, %vm701_vm9 }
 0x3e4   :  { %v697_v1 = vsub.f32 1.0, %v696_v21  ;;  %v734_v36 = vand.u32 2147483647, %v693_v7  ;;  %v736_v35 = vand.u32 2147483648, %v693_v7  ;;  %vm1422_vm11 = vmor %vm715_vm8, %vm716_vm4  ;;  %vm764_vm1 = vcmask 523264  }
 0x3e5   :  { %v712_v24 = vsub.f32 1.0, %v711_v20 }
 0x3e6   :  { %v698_v41 = vmul.f32 %v1390_v28, %v697_v1  ;;  %v737_v52 = vor.u32 1.1754944e-38, %v736_v35  ;;  %vm735_vm14 = vcmp.eq.f32.partialorder %v734_v36, 8.507059e+37 }
 0x3e7   :  { %v713_v38 = vmul.f32 %v1392_v9, %v712_v24 }
 0x3e8   :  { %v914_v10 = vpop.eup %913  ;;  %v699_v48 = vadd.f32 %v1390_v28, %v698_v41 }
 0x3e9   :  { %v916_v11 = vpop.eup %915  ;;  %v694_v19 = vadd.f32 1.0, %v914_v10  ;;  %v714_v12 = vadd.f32 %v1392_v9, %v713_v38 }
 0x3ea   :  { %v726_v27 = vmul.f32 %v916_v11, %v693_v7  ;;  %vm731_vm2 = vweird.f32 %v916_v11  ;;  %v703_v62 = vsel %vm702_vm15, %v1390_v28, %v699_v48 }
 0x3eb   :  { %917 = vrcp.f32 %v694_v19  ;;  %v751_v17 = vand.u32 2147483648, %v694_v19  ;;  %v749_v44 = vand.u32 2147483647, %v694_v19  ;;  %vm1410_vm7 = vmor %vm730_vm5, %vm731_vm2  ;;  %vm745_vm10 = vweird.f32 %v694_v19 }
 0x3ec   :  { %v727_v22 = vsub.f32 1.0, %v726_v27  ;;  %919 = vtanh.f32 %v655_v23  ;;  %v718_v58 = vsel %vm1422_vm11, %v1392_v9, %v714_v12  ;;  %v708_v3 = vsel %vm705_vm3, %v707_v4, %v703_v62 }
 0x3ed   :  { %921 = vtanh.f32 %v658_v34  ;;  %v752_v51 = vor.u32 1.1754944e-38, %v751_v17  ;;  %vm750_vm13 = vcmp.eq.f32.partialorder %v749_v44, 8.507059e+37  ;;  %v723_v33 = vsel %vm720_vm0, %v722_v60, %v718_v58 }
 0x3ee   :  { %v728_v26 = vmul.f32 %v916_v11, %v727_v22  ;;  %923 = vtanh.f32 %v661_v25 }
 0x3ef   :  { %925 = vtanh.f32 %v652_v31 }
 0x3f0   :  { %v729_v8 = vadd.f32 %v916_v11, %v728_v26 }
 0x3f1   :  { %v918_v30 = vpop.eup %917 }
 0x3f2   :  { %v741_v32 = vmul.f32 %v918_v30, %v694_v19  ;;  %vm746_vm6 = vweird.f32 %v918_v30  ;;  %v920_v29 = vpop.eup %919  ;;  %v733_v47 = vsel %vm1410_vm7, %v916_v11, %v729_v8 }
 0x3f3   :  { %v922_v45 = vpop.eup %921  ;;  %vm747_vm12 = vmor %vm745_vm10, %vm746_vm6  ;;  %v738_v57 = vsel %vm735_vm14, %v737_v52, %v733_v47  ;;  %v756_v5 = vmul.f32 %v920_v29, %v723_v33 }
 0x3f4   :  { %v742_v56 = vsub.f32 1.0, %v741_v32  ;;  %v924_v49 = vpop.eup %923  ;;  %v757_v63 = vmul.f32 %v922_v45, %v738_v57 }
 0x3f5   :  { %v926_v14 = vpop.eup %925 }
 0x3f6   :  { %v743_v39 = vmul.f32 %v918_v30, %v742_v56  ;;  %v755_v6 = vmul.f32 %v926_v14, %v708_v3 }
 0x3f8   :  { %v744_v15 = vadd.f32 %v918_v30, %v743_v39 }
 0x3fa   :  { %v748_v55 = vsel %vm747_vm12, %v918_v30, %v744_v15 }
 0x3fb   :  { %v753_v59 = vsel %vm750_vm13, %v752_v51, %v748_v55 }
 0x3fc   :  { %v758_v61 = vmul.f32 %v924_v49, %v753_v59 }
 0x3fe   :  { %776 = vmatpush.msra.mxu2 %v758_v61 }
 0x400   :  { %777 = vmatpush.msra.mxu2 %v757_v63 }
 0x402   :  { %778 = vmatpush.msra.mxu2 %v756_v5 }
 0x404   :  { %779 = vmatpush.msra.mxu2 %v755_v6 }
 0x406   :  { %780 = vmatpush.msra.mxu2 %v1325_v46 }
 0x408   :  { %781 = vmatpush.msra.mxu2 %v1318_v42 }
 0x40a   :  { %782 = vmatpush.msra.mxu2 %v1311_v43 }
 0x40c   :  { %783 = vmatpush.msra.mxu2 %v1306_v50 }
 0x40d   :  { %841 = vmatmul.msk.f32.vlgmr.msra.gmra.mxu2 %vm764_vm1, %v53_v0 }
 0x490   :  { %v785_v7 = vpop.f32.mrf.mxu2 }
 0x491   :  { %v786_v28 = vadd.f32 %v785_v7, %v762_v2 }
 0x493   :  { %788 = vst [vmem:[%s1450_s2] sm:$0xff] %v786_v28 }

</bundles_post_ra>
